<compile_context>
chip_gen: v6e
topology: v6e:2x2x1
jax: 0.10.0
libtpu: 0.0.40
codegen_flags: <defaults>
</compile_context>

<pallas_src>
import math
from functools import partial

import jax
import jax.numpy as jnp
from jax.experimental import pallas as pl
from jax.experimental.pallas import tpu as pltpu

_LANE = 128
_TARGET_TILE_BYTES = 2 << 20  # ~2 MiB per x tile; safe on every generation's default VMEM


def _build_pe(d_model: int, max_len: int = 100) -> jnp.ndarray:
    """Sinusoidal positional-encoding buffer (mirrors the module's __init__)."""
    position = jnp.arange(0, max_len, dtype=jnp.float32)[:, None]             # (max_len, 1)
    div_term = jnp.exp(
        jnp.arange(0, d_model, 2, dtype=jnp.float32) * (-math.log(10000.0) / d_model)
    )                                                                          # (ceil(d/2),)
    angles = position * div_term                                               # (max_len, ceil(d/2))
    pe = jnp.zeros((max_len, d_model), dtype=jnp.float32)
    pe = pe.at[:, 0::2].set(jnp.sin(angles))
    # Guard odd d_model (the torch original would shape-mismatch there).
    pe = pe.at[:, 1::2].set(jnp.cos(angles[:, : d_model // 2]))
    return pe


def _pe_add_kernel(x_ref, pe_ref, o_ref):
    # x_ref / o_ref: (bt, tr, L); pe_ref: (tr, L) broadcast over the batch tile.
    o_ref[...] = x_ref[...] + pe_ref[...]


def _choose_tiles(B: int, R: int, L: int, itemsize: int):
    """Pick (batch_tile, row_tile) so one x tile is ~_TARGET_TILE_BYTES."""
    row_bytes = L * itemsize
    per_batch = R * row_bytes
    if per_batch <= _TARGET_TILE_BYTES:
        # Whole per-batch slab fits: keep pe fully resident, fold batch in.
        tr = R
        bt = max(1, min(B, _TARGET_TILE_BYTES // max(per_batch, 1)))
    else:
        # Split rows (only reached on the lane-flattened path, L == 128).
        bt = 1
        sub = 16 if itemsize < 4 else 8
        tr = max(sub, (_TARGET_TILE_BYTES // row_bytes) // sub * sub)
        tr = min(tr, R)
    return bt, tr


def _pe_add_pallas(x3: jnp.ndarray, pe2: jnp.ndarray, bt: int, tr: int) -> jnp.ndarray:
    """x3: (B, R, L); pe2: (R, L), same dtype.  Returns x3 + pe2[None]."""
    B, R, L = x3.shape
    itemsize = jnp.dtype(x3.dtype).itemsize
    grid = (pl.cdiv(B, bt), pl.cdiv(R, tr))  # both axes independent -> megacore-shardable

    cost = pl.CostEstimate(
        flops=B * R * L,
        transcendentals=0,
        bytes_accessed=(2 * B * R * L + R * L) * itemsize,
    )

    return pl.pallas_call(
        _pe_add_kernel,
        out_shape=jax.ShapeDtypeStruct((B, R, L), x3.dtype),
        grid=grid,
        in_specs=[
            pl.BlockSpec((bt, tr, L), lambda b, r: (b, r, 0)),
            pl.BlockSpec((tr, L), lambda b, r: (r, 0)),  # constant over b; tiny
        ],
        out_specs=pl.BlockSpec((bt, tr, L), lambda b, r: (b, r, 0)),
        compiler_params=pltpu.CompilerParams(
            dimension_semantics=("parallel", "parallel"),
        ),
        cost_estimate=cost,
    )(x3, pe2)


@partial(jax.jit, static_argnames=("min_pallas_bytes",))
def positional_encoding_forward(
    x: jnp.ndarray, pe: jnp.ndarray, *, min_pallas_bytes: int = 1 << 20
) -> jnp.ndarray:
    """x: (B, S, D); pe: (max_len, D).  Returns x + pe[:S, :] (broadcast over B)."""
    B, S, D = x.shape
    itemsize = jnp.dtype(x.dtype).itemsize
    pe_slice = pe[:S, :].astype(x.dtype)  # fuses under this jit; see numerics note above
    total_bytes = x.size * itemsize

    if total_bytes < min_pallas_bytes:
        # Tiny problem: the fused XLA add beats the kernel launch overhead.
        return x + pe_slice[None, :, :]

    if D % _LANE == 0:
        # Lane-dense view: (B, S, D) -> (B, S*D/128, 128) is layout-free when D % 128 == 0.
        R, L = (S * D) // _LANE, _LANE
        x3 = x.reshape(B, R, L)
        pe2 = pe_slice.reshape(R, L)
    else:
        # Keep full (S, D) trailing dims (always a legal block) instead of paying a
        # physical relayout of x.  pe slab is tiny (S <= max_len), so tile over batch.
        per_batch = S * D * itemsize
        if per_batch > _TARGET_TILE_BYTES:
            # Rare (needs D > ~5k with max_len=100): the plain add is roofline anyway.
            return x + pe_slice[None, :, :]
        R, L = S, D
        x3, pe2 = x, pe_slice

    bt, tr = _choose_tiles(B, R, L, itemsize)
    out = _pe_add_pallas(x3, pe2, bt, tr)
    return out.reshape(B, S, D)


if __name__ == "__main__":
    MAX_LEN = 100
    key = jax.random.PRNGKey(0)

    # Small shape, D not a multiple of 128 -> un-flattened (bt, S, D) path.
    B, S, D = 2, 8, 32
    x = jax.random.normal(key, (B, S, D), dtype=jnp.float32)
    pe = _build_pe(D, MAX_LEN)
    ref = x + pe[:S, :]
    # min_pallas_bytes=0 forces the Pallas path even at this tiny test size so the
    # kernel itself is exercised; production callers keep the default threshold.
    out = jax.block_until_ready(positional_encoding_forward(x, pe, min_pallas_bytes=0))
    assert out.shape == (B, S, D)
    assert jnp.allclose(out, ref, atol=1e-6), "mismatch vs reference (D=32 path)"

    # D multiple of 128 -> lane-flattened (bt, tr, 128) path with batch folding.
    B2, S2, D2 = 2, 64, 256
    x2 = jax.random.normal(jax.random.PRNGKey(1), (B2, S2, D2), dtype=jnp.float32)
    pe_big = _build_pe(D2, MAX_LEN)
    ref2 = x2 + pe_big[:S2, :]
    out2 = jax.block_until_ready(
        positional_encoding_forward(x2, pe_big, min_pallas_bytes=0)
    )
    assert out2.shape == (B2, S2, D2)
    assert jnp.allclose(out2, ref2, atol=1e-6), "mismatch vs reference (D=256 path)"

    print("KERNEL_OK")
</pallas_src>

<mosaic_0001>
module attributes {stable_mosaic.version = 11 : i64} {
  func.func @_pe_add_kernel(%arg0: i32, %arg1: i32, %arg2: memref<2x8x32xf32, #tpu.memory_space<vmem>>, %arg3: memref<8x32xf32, #tpu.memory_space<vmem>>, %arg4: memref<2x8x32xf32, #tpu.memory_space<vmem>>) attributes {dimension_semantics = [#tpu.dimension_semantics<parallel>, #tpu.dimension_semantics<parallel>], iteration_bounds = array<i64: 1, 1>, scalar_prefetch = 0 : i64, scratch_operands = 0 : i64, tpu.core_type = #tpu.core_type<tc>, window_params = [{transform_indices = @transform_0, window_bounds = array<i64: 2, 8, 32>}, {transform_indices = @transform_1, window_bounds = array<i64: 8, 32>}, {transform_indices = @transform_2, window_bounds = array<i64: 2, 8, 32>}]} {
    %c0 = arith.constant 0 : index
    %c0_0 = arith.constant 0 : index
    %c0_1 = arith.constant 0 : index
    %0 = vector.load %arg2[%c0, %c0_0, %c0_1] : memref<2x8x32xf32, #tpu.memory_space<vmem>>, vector<2x8x32xf32>
    %c0_2 = arith.constant 0 : index
    %c0_3 = arith.constant 0 : index
    %1 = vector.load %arg3[%c0_2, %c0_3] : memref<8x32xf32, #tpu.memory_space<vmem>>, vector<8x32xf32>
    %2 = vector.shape_cast %1 : vector<8x32xf32> to vector<1x8x32xf32>
    %3 = vector.broadcast %2 : vector<1x8x32xf32> to vector<2x8x32xf32>
    %4 = arith.addf %0, %3 : vector<2x8x32xf32>
    %c0_4 = arith.constant 0 : index
    %c0_5 = arith.constant 0 : index
    %c0_6 = arith.constant 0 : index
    %5 = vector.load %arg4[%c0_4, %c0_5, %c0_6] : memref<2x8x32xf32, #tpu.memory_space<vmem>>, vector<2x8x32xf32>
    tpu.vector_store %arg4[%c0_4, %c0_5, %c0_6], %4 {strides = array<i32>} : memref<2x8x32xf32, #tpu.memory_space<vmem>>, vector<2x8x32xf32>,
    return
  }
  func.func @transform_0(%arg0: i32, %arg1: i32) -> (i32, i32, i32) {
    %c0_i32 = arith.constant 0 : i32
    %c0_i32_0 = arith.constant 0 : i32
    return %arg0, %arg1, %c0_i32 : i32, i32, i32
  }
  func.func @transform_1(%arg0: i32, %arg1: i32) -> (i32, i32) {
    %c0_i32 = arith.constant 0 : i32
    %c0_i32_0 = arith.constant 0 : i32
    return %arg1, %c0_i32 : i32, i32
  }
  func.func @transform_2(%arg0: i32, %arg1: i32) -> (i32, i32, i32) {
    %c0_i32 = arith.constant 0 : i32
    %c0_i32_0 = arith.constant 0 : i32
    return %arg0, %arg1, %c0_i32 : i32, i32, i32
  }
}

</mosaic_0001>

<bundles_post_ra>
// kernel: positional_encoding_forward.1
= control target key start
LH: loop header
LB: loop body
LE: loop exit
PB: predicated region body
PF: predicated region fallthrough
CT: control target
= control target key end

     0   :  { %vm17_vm0 = vcmask 261120   ;;  %s91_s0 = inlined_call_operand.vmem [shape: f32[2,8,32], index: 0, kind: input, shape index: {}]   ;;  %s92_s1 = inlined_call_operand.vmem [shape: f32[8,32], index: 1, kind: input, shape index: {}]   ;;  %s93_s2 = inlined_call_operand.hbm [shape: f32[2,8,32], index: 2, kind: output, shape index: {}]  }
   0x1   :  { %v12_v0 = vld [vmem:[%s91_s0] sm:$0xff]  ;;  %v13_v2 = vld [vmem:[%s91_s0 + $0x8] sm:$0xff] }
   0x2   :  { %v14_v1 = vld [vmem:[%s92_s1] sm:$0xff] }
   0x3   :  { %v15_v3 = vadd.f32 %v14_v1, %v12_v0  ;;  %v16_v4 = vadd.f32 %v14_v1, %v13_v2 }
   0x4   :  { %7 = vsyncpa [#allocation3], 0  ;;  %s61_s15 = smov [#allocation2]  }
   0x5   :  { %s25_s16 = sshll.u32 %s61_s15, 4  ;;  %18 = vst.msk [vmem:[#allocation2] sm:$0xff] %vm17_vm0, %v15_v3  ;;  %19 = vst.msk [vmem:[#allocation2 + $0x8] sm:$0xff] %vm17_vm0, %v16_v4  ;;  %s26_s16 = int_to_ptr.vmem [resolvable:$true] %s25_s16 }
   0x6   :  { %s39_s17 = scalar_lea.vmem %s26_s16, 256  ;;  %p44_p1 = scmp.lt.s32.totalorder %s26_s16, %s26_s16 }
   0x7   :  { %p40_p0 = scmp.ne.s32.totalorder %s26_s16, %s39_s17  ;;  %p45_p2 = scmp.lt.s32.totalorder %s39_s17, %s39_s17 }
   0x9   :  { %p46_p3 = por %p45_p2, %p44_p1 }
   0xb   :  { %p47_p4 = pnand %p46_p3, %p40_p0 }
   0xd   :  { %50 = shalt.err (!%p47_p4)
}
   0xe   :  { %s62_s1 = smov 128   ;;  %s63_s18 = smov 8  }
   0xf   :  { %31 = dma.vmem_to_hbm [thread:$0]  %s26_s16, 256, %s93_s2, [#allocation3], %s62_s1, %s62_s1, %s63_s18  }
  0x10   :  { %59 = dma.done.wait [#allocation3], 256  }
  0x11   :  { %60 = vsyncadd [#allocation3], 4294967040 }
  0x12   :  { %35 = vsyncpa [#allocation3], 1 }

</bundles_post_ra>
